<compile_context>
chip_gen: v5e
topology: v5e:2x2
jax: 0.10.0
libtpu: 0.0.40
codegen_flags: <defaults>
</compile_context>

<pallas_src>
import math
import functools

import jax
import jax.numpy as jnp
from jax.experimental import pallas as pl
from jax.experimental.pallas import tpu as pltpu


# ---------------------------------------------------------------------------
# Kernel
# ---------------------------------------------------------------------------
def _channel_gate_kernel(x_ref, w1_ref, b1_ref, w2_ref, b2_ref, o_ref, *, hw):
    # x_ref: (tb, C, HW) f32   w1: (C, Cr)  b1: (1, Cr)  w2: (Cr, C)  b2: (1, C)
    x = x_ref[...]                                                  # (tb, C, HW)

    # 1) AdaptiveAvgPool2d(1): mean over the spatial (lane) axis.
    avg = jnp.sum(x, axis=-1) * jnp.float32(1.0 / hw)               # (tb, C)

    # 2) MLP: Linear -> LeakyReLU(0.05) -> Linear.
    #    Contracted dims are tiny, so use exact f32 VPU broadcast+reduce.
    #    (For large gate_channels, switch to jnp.dot on the MXU.)
    w1 = w1_ref[...]                                                # (C, Cr)
    w2 = w2_ref[...]                                                # (Cr, C)
    h = jnp.sum(avg[:, :, None] * w1[None, :, :], axis=1) + b1_ref[...]   # (tb, Cr)
    h = jnp.where(h >= 0, h, jnp.float32(0.05) * h)                 # LeakyReLU(0.05)
    g = jnp.sum(h[:, :, None] * w2[None, :, :], axis=1) + b2_ref[...]     # (tb, C)

    # 3) sigmoid gate, broadcast over spatial, elementwise multiply.
    scale = jax.nn.sigmoid(g)                                       # (tb, C)
    o_ref[...] = (x * scale[:, :, None]).astype(o_ref.dtype)


# ---------------------------------------------------------------------------
# Wrapper
# ---------------------------------------------------------------------------
def channel_gate(x, w1, b1, w2, b2, *, batch_tile=None,
                 vmem_budget_bytes=8 << 20):
    """x: (B, C, H, W) f32.  w1: (C, Cr), b1: (Cr,), w2: (Cr, C), b2: (C,)."""
    B, C, H, W = x.shape
    HW = H * W
    Cr = w1.shape[1]
    assert w1.shape == (C, Cr) and w2.shape == (Cr, C)
    assert b1.shape == (Cr,) and b2.shape == (C,)

    # Lane-dense layout: last dim = H*W (multiple of 128 for the demo shapes).
    x2 = x.reshape(B, C, HW)
    b1_2 = b1.reshape(1, Cr)
    b2_2 = b2.reshape(1, C)

    # Choose a batch tile so (in + out) blocks stay inside the VMEM budget and
    # the whole batch fits in one grid step when possible.
    per_batch_bytes = 2 * C * HW * x.dtype.itemsize                # in + out, one row
    if batch_tile is None:
        batch_tile = max(1, min(B, vmem_budget_bytes // max(per_batch_bytes, 1)))
        while B % batch_tile:                                      # keep blocks exact
            batch_tile -= 1
    nb = B // batch_tile
    # TODO(synk): for very large C*H*W a single batch row may exceed VMEM; that
    # would need a two-pass (spatial-tiled sum, then gate/multiply) pipeline.

    block_bytes = batch_tile * C * HW * x.dtype.itemsize
    weight_bytes = (C * Cr * 2 + Cr + C) * 4
    # Double-buffered in + out blocks + resident weights + headroom, clamped so
    # it stays sane on v7x (64 MiB physical VMEM).
    vmem_limit = int(min(max(4 * block_bytes + weight_bytes + (8 << 20), 32 << 20),
                         64 << 20))

    cost = pl.CostEstimate(
        flops=3 * B * C * HW + 4 * B * C * Cr,     # mean + gating mul + tiny MLP
        transcendentals=B * C,                      # sigmoid
        bytes_accessed=2 * B * C * HW * x.dtype.itemsize + weight_bytes,
    )

    kernel = functools.partial(_channel_gate_kernel, hw=HW)

    out = pl.pallas_call(
        kernel,
        out_shape=jax.ShapeDtypeStruct((B, C, HW), x.dtype),
        grid=(nb,),
        in_specs=[
            pl.BlockSpec((batch_tile, C, HW), lambda i: (i, 0, 0)),
            pl.BlockSpec((C, Cr), lambda i: (0, 0)),   # resident (constant index)
            pl.BlockSpec((1, Cr), lambda i: (0, 0)),
            pl.BlockSpec((Cr, C), lambda i: (0, 0)),
            pl.BlockSpec((1, C), lambda i: (0, 0)),
        ],
        out_specs=pl.BlockSpec((batch_tile, C, HW), lambda i: (i, 0, 0)),
        compiler_params=pltpu.CompilerParams(
            dimension_semantics=("parallel",),
            vmem_limit_bytes=vmem_limit,
        ),
        cost_estimate=cost,
    )(x2, w1, b1_2, w2, b2_2)

    return out.reshape(B, C, H, W)


# ---------------------------------------------------------------------------
if __name__ == "__main__":
    # Module hyperparameters (small, consistent with the forward).
    gate_channels = 4
    reduction_ratio = 2
    B, C, H, W = 2, gate_channels, 16, 16
    Cr = gate_channels // reduction_ratio

    key = jax.random.PRNGKey(0)
    kx, k1, k2, k3, k4 = jax.random.split(key, 5)
    x = jax.random.normal(kx, (B, C, H, W), dtype=jnp.float32)
    # Linear weights stored as (in_features, out_features) so the MLP is avg @ w + b.
    w1 = jax.random.normal(k1, (C, Cr), dtype=jnp.float32) / math.sqrt(C)
    b1 = jax.random.normal(k2, (Cr,), dtype=jnp.float32) * 0.1
    w2 = jax.random.normal(k3, (Cr, C), dtype=jnp.float32) / math.sqrt(Cr)
    b2 = jax.random.normal(k4, (C,), dtype=jnp.float32) * 0.1

    out = channel_gate(x, w1, b1, w2, b2)
    out = jax.block_until_ready(out)

    # Pure-JAX reference mirroring the PyTorch forward.
    avg = jnp.mean(x, axis=(2, 3))                                       # (B, C)
    h = jnp.sum(avg[:, :, None] * w1[None, :, :], axis=1) + b1           # (B, Cr)
    h = jnp.where(h >= 0, h, 0.05 * h)                                   # LeakyReLU(0.05)
    g = jnp.sum(h[:, :, None] * w2[None, :, :], axis=1) + b2             # (B, C)
    scale = jax.nn.sigmoid(g)
    ref = x * scale[:, :, None, None]

    assert out.shape == x.shape
    max_err = float(jnp.max(jnp.abs(out - ref)))
    assert jnp.allclose(out, ref, atol=1e-4, rtol=1e-4), f"max_err={max_err}"
    print("KERNEL_OK")
</pallas_src>

<mosaic_0001>
module attributes {stable_mosaic.version = 11 : i64} {
  func.func @_channel_gate_kernel(%arg0: i32, %arg1: memref<2x4x256xf32, #tpu.memory_space<vmem>>, %arg2: memref<4x2xf32, #tpu.memory_space<vmem>>, %arg3: memref<1x2xf32, #tpu.memory_space<vmem>>, %arg4: memref<2x4xf32, #tpu.memory_space<vmem>>, %arg5: memref<1x4xf32, #tpu.memory_space<vmem>>, %arg6: memref<2x4x256xf32, #tpu.memory_space<vmem>>) attributes {dimension_semantics = [#tpu.dimension_semantics<parallel>], iteration_bounds = array<i64: 1>, scalar_prefetch = 0 : i64, scratch_operands = 0 : i64, tpu.core_type = #tpu.core_type<tc>, window_params = [{transform_indices = @transform_0, window_bounds = array<i64: 2, 4, 256>}, {pipeline_mode = #tpu.pipeline_mode<synchronous>, transform_indices = @transform_1, window_bounds = array<i64: 4, 2>}, {pipeline_mode = #tpu.pipeline_mode<synchronous>, transform_indices = @transform_2, window_bounds = array<i64: 1, 2>}, {pipeline_mode = #tpu.pipeline_mode<synchronous>, transform_indices = @transform_3, window_bounds = array<i64: 2, 4>}, {pipeline_mode = #tpu.pipeline_mode<synchronous>, transform_indices = @transform_4, window_bounds = array<i64: 1, 4>}, {transform_indices = @transform_5, window_bounds = array<i64: 2, 4, 256>}]} {
    %c0 = arith.constant 0 : index
    %c0_0 = arith.constant 0 : index
    %c0_1 = arith.constant 0 : index
    %0 = vector.load %arg1[%c0, %c0_0, %c0_1] : memref<2x4x256xf32, #tpu.memory_space<vmem>>, vector<2x4x256xf32>
    %cst = arith.constant dense<0.000000e+00> : vector<2x4xf32>
    %1 = vector.multi_reduction <add>, %0, %cst [2] : vector<2x4x256xf32> to vector<2x4xf32>
    %cst_2 = arith.constant 3.906250e-03 : f32
    %2 = vector.broadcast %cst_2 : f32 to vector<2x4xf32>
    %3 = arith.mulf %1, %2 : vector<2x4xf32>
    %c0_3 = arith.constant 0 : index
    %c0_4 = arith.constant 0 : index
    %4 = vector.load %arg2[%c0_3, %c0_4] : memref<4x2xf32, #tpu.memory_space<vmem>>, vector<4x2xf32>
    %c0_5 = arith.constant 0 : index
    %c0_6 = arith.constant 0 : index
    %5 = vector.load %arg4[%c0_5, %c0_6] : memref<2x4xf32, #tpu.memory_space<vmem>>, vector<2x4xf32>
    %6 = vector.shape_cast %3 : vector<2x4xf32> to vector<2x4x1xf32>
    %7 = vector.shape_cast %4 : vector<4x2xf32> to vector<1x4x2xf32>
    %8 = vector.broadcast %6 : vector<2x4x1xf32> to vector<2x4x2xf32>
    %9 = vector.broadcast %7 : vector<1x4x2xf32> to vector<2x4x2xf32>
    %10 = arith.mulf %8, %9 : vector<2x4x2xf32>
    %cst_7 = arith.constant dense<0.000000e+00> : vector<2x2xf32>
    %11 = vector.multi_reduction <add>, %10, %cst_7 [1] : vector<2x4x2xf32> to vector<2x2xf32>
    %c0_8 = arith.constant 0 : index
    %c0_9 = arith.constant 0 : index
    %12 = vector.load %arg3[%c0_8, %c0_9] : memref<1x2xf32, #tpu.memory_space<vmem>>, vector<1x2xf32>
    %13 = vector.broadcast %12 : vector<1x2xf32> to vector<2x2xf32>
    %14 = arith.addf %11, %13 : vector<2x2xf32>
    %cst_10 = arith.constant 0.000000e+00 : f32
    %15 = vector.broadcast %cst_10 : f32 to vector<2x2xf32>
    %16 = arith.cmpf oge, %14, %15 : vector<2x2xf32>
    %cst_11 = arith.constant 5.000000e-02 : f32
    %17 = vector.broadcast %cst_11 : f32 to vector<2x2xf32>
    %18 = arith.mulf %17, %14 : vector<2x2xf32>
    %19 = arith.select %16, %14, %18 : vector<2x2xi1>, vector<2x2xf32>
    %20 = vector.shape_cast %19 : vector<2x2xf32> to vector<2x2x1xf32>
    %21 = vector.shape_cast %5 : vector<2x4xf32> to vector<1x2x4xf32>
    %22 = vector.broadcast %20 : vector<2x2x1xf32> to vector<2x2x4xf32>
    %23 = vector.broadcast %21 : vector<1x2x4xf32> to vector<2x2x4xf32>
    %24 = arith.mulf %22, %23 : vector<2x2x4xf32>
    %cst_12 = arith.constant dense<0.000000e+00> : vector<2x4xf32>
    %25 = vector.multi_reduction <add>, %24, %cst_12 [1] : vector<2x2x4xf32> to vector<2x4xf32>
    %c0_13 = arith.constant 0 : index
    %c0_14 = arith.constant 0 : index
    %26 = vector.load %arg5[%c0_13, %c0_14] : memref<1x4xf32, #tpu.memory_space<vmem>>, vector<1x4xf32>
    %27 = vector.broadcast %26 : vector<1x4xf32> to vector<2x4xf32>
    %28 = arith.addf %25, %27 : vector<2x4xf32>
    %29 = arith.negf %28 : vector<2x4xf32>
    %30 = math.exp %29 : vector<2x4xf32>
    %cst_15 = arith.constant 1.000000e+00 : f32
    %31 = vector.broadcast %cst_15 : f32 to vector<2x4xf32>
    %32 = arith.addf %31, %30 : vector<2x4xf32>
    %33 = arith.divf %31, %32 : vector<2x4xf32>
    %34 = vector.shape_cast %33 : vector<2x4xf32> to vector<2x4x1xf32>
    %35 = vector.broadcast %34 : vector<2x4x1xf32> to vector<2x4x256xf32>
    %36 = arith.mulf %0, %35 : vector<2x4x256xf32>
    %c0_16 = arith.constant 0 : index
    %c0_17 = arith.constant 0 : index
    %c0_18 = arith.constant 0 : index
    %37 = vector.load %arg6[%c0_16, %c0_17, %c0_18] : memref<2x4x256xf32, #tpu.memory_space<vmem>>, vector<2x4x256xf32>
    tpu.vector_store %arg6[%c0_16, %c0_17, %c0_18], %36 {strides = array<i32>} : memref<2x4x256xf32, #tpu.memory_space<vmem>>, vector<2x4x256xf32>,
    return
  }
  func.func @transform_0(%arg0: i32) -> (i32, i32, i32) {
    %c0_i32 = arith.constant 0 : i32
    %c0_i32_0 = arith.constant 0 : i32
    %c0_i32_1 = arith.constant 0 : i32
    return %arg0, %c0_i32, %c0_i32_0 : i32, i32, i32
  }
  func.func @transform_1(%arg0: i32) -> (i32, i32) {
    %c0_i32 = arith.constant 0 : i32
    %c0_i32_0 = arith.constant 0 : i32
    %c0_i32_1 = arith.constant 0 : i32
    return %c0_i32, %c0_i32_0 : i32, i32
  }
  func.func @transform_2(%arg0: i32) -> (i32, i32) {
    %c0_i32 = arith.constant 0 : i32
    %c0_i32_0 = arith.constant 0 : i32
    %c0_i32_1 = arith.constant 0 : i32
    return %c0_i32, %c0_i32_0 : i32, i32
  }
  func.func @transform_3(%arg0: i32) -> (i32, i32) {
    %c0_i32 = arith.constant 0 : i32
    %c0_i32_0 = arith.constant 0 : i32
    %c0_i32_1 = arith.constant 0 : i32
    return %c0_i32, %c0_i32_0 : i32, i32
  }
  func.func @transform_4(%arg0: i32) -> (i32, i32) {
    %c0_i32 = arith.constant 0 : i32
    %c0_i32_0 = arith.constant 0 : i32
    %c0_i32_1 = arith.constant 0 : i32
    return %c0_i32, %c0_i32_0 : i32, i32
  }
  func.func @transform_5(%arg0: i32) -> (i32, i32, i32) {
    %c0_i32 = arith.constant 0 : i32
    %c0_i32_0 = arith.constant 0 : i32
    %c0_i32_1 = arith.constant 0 : i32
    return %arg0, %c0_i32, %c0_i32_0 : i32, i32, i32
  }
}

</mosaic_0001>

<bundles_post_ra>
// kernel: tpu_custom_call.1
= control target key start
LH: loop header
LB: loop body
LE: loop exit
PB: predicated region body
PF: predicated region fallthrough
CT: control target
= control target key end

     0   :  { %10 = vsyncpa [#allocation3], 0  ;;  %s359_s0 = inlined_call_operand.hbm [shape: f32[2,4,256], index: 0, kind: input, shape index: {}]   ;;  %s360_s1 = inlined_call_operand.vmem [shape: f32[4,2], index: 1, kind: input, shape index: {}]   ;;  %s361_s2 = inlined_call_operand.vmem [shape: f32[1,2], index: 2, kind: input, shape index: {}]   ;;  %s362_s3 = inlined_call_operand.vmem [shape: f32[2,4], index: 3, kind: input, shape index: {}]   ;;  %s363_s4 = inlined_call_operand.vmem [shape: f32[1,4], index: 4, kind: input, shape index: {}]   ;;  %s364_s5 = inlined_call_operand.hbm [shape: f32[2,4,256], index: 5, kind: output, shape index: {}]  }
   0x1   :  { %11 = vsyncpa [#allocation4], 0  ;;  %s16_s20 = sshll.u32 %s359_s0, 4  ;;  %s292_s21 = smov [#allocation2]   ;;  %s17_s20 = int_to_ptr.hbm [resolvable:$true] %s16_s20 }
   0x2   :  { %s18_s22 = sshll.u32 %s292_s21, 4  ;;  %s293_s23 = smov 128   ;;  %s19_s22 = int_to_ptr.vmem [resolvable:$true] %s18_s22 }
   0x3   :  { %s294_s24 = smov 8  }
   0x4   :  { %24 = dma.hbm_to_vmem [thread:$0]  %s17_s20, 256, %s19_s22, [#allocation3], %s293_s23, %s293_s23, %s294_s24  }
   0x5   :  { %288 = dma.done.wait [#allocation3], 256  }
   0x6   :  { %289 = vsyncadd [#allocation3], 4294967040  ;;  %v333_v0 = vld [vmem:[#allocation2] sm:$0xff]  ;;  %v335_v1 = vld [vmem:[#allocation2 + $0x8] sm:$0xff]  ;;  %vm52_vm0 = vcmask 1043456   ;;  %v97_v12 = vlaneseq  ;;  %vm69_vm1 = vcmask 11264  }
   0x7   :  { %41 = vst [vmem:[#allocation1] ss:$2 sm:$0xff] %v333_v0  ;;  %v65_v14 = vld [vmem:[%s360_s1] sm:$0xf]  ;;  %vm112_vm4 = vcmask 25600   ;;  %s207_s7 = sshll.u32 %s364_s5, 4  ;;  %s208_s7 = int_to_ptr.hbm [resolvable:$true] %s207_s7 }
   0x8   :  { %45 = vst [vmem:[#allocation1 + $0x10] ss:$2 sm:$0xff] %v335_v1  ;;  %v98_v13 = vshrl.u32 %v97_v12, 7  ;;  %v230_v29 = vld [vmem:[%s361_s2] ss:$0 sm:$0xff] }
   0x9   :  { %v66_v44 = vld [vmem:[%s362_s3] sm:$0x3]  ;;  %s296_s3 = smov [#allocation5]  }
   0xa   :  { %227 = vset.pattern.permute.xlu1 %v98_v13  ;;  %228 = vset.pattern.permute.xlu2 %v98_v13  ;;  %v231_v55 = vld [vmem:[%s363_s4] ss:$0 sm:$0xff]  ;;  %s205_s4 = sshll.u32 %s296_s3, 4  ;;  %s206_s4 = int_to_ptr.vmem [resolvable:$true] %s205_s4 }
   0xb   :  { %229 = vset.pattern.permute.xlu0 %v98_v13 }
   0xe   :  { %v42_v2 = vld.sshfl [vmem:[#allocation1] sm:$0xff pattern:$0x75316420]  ;;  %v43_v3 = vld.sshfl [vmem:[#allocation1 + $0x8] sm:$0xff pattern:$0x75316420] }
   0xf   :  { %v53_v4 = vsel %vm52_vm0, %v42_v2, 0.0  ;;  %v54_v5 = vsel %vm52_vm0, %v43_v3, 0.0  ;;  %v46_v7 = vld.sshfl [vmem:[#allocation1 + $0x10] sm:$0xff pattern:$0x75316420] }
  0x10   :  { %v55_v6 = vadd.f32 %v54_v5, %v53_v4  ;;  %v47_v8 = vld.sshfl [vmem:[#allocation1 + $0x18] sm:$0xff pattern:$0x75316420]  ;;  %v58_v9 = vsel %vm52_vm0, %v46_v7, 0.0 }
  0x11   :  { %v59_v10 = vsel %vm52_vm0, %v47_v8, 0.0 }
  0x12   :  { %56 = vadd.xlane.f32.xlu0 %v55_v6  ;;  %v60_v11 = vadd.f32 %v59_v10, %v58_v9 }
  0x1a   :  { %61 = vadd.xlane.f32.xlu0 %v60_v11 }
  0x85   :  { %v57_v15 = vpop.xlane.xlu0 %56 }
  0x86   :  { %v63_v16 = vmul.f32 0.00390625, %v57_v15 }
  0x88   :  { %v67_v17 = vmul.f32 %v65_v14, %v63_v16 }
  0x8a   :  { %v70_v18 = vsel %vm69_vm1, %v67_v17, 0.0 }
  0x8b   :  { %v71_v19 = vrot.slane %v70_v18, 4 }
  0x8d   :  { %v72_v20 = vadd.f32 %v71_v19, %v70_v18  ;;  %v62_v21 = vpop.xlane.xlu0 %61 }
  0x8e   :  { %v64_v22 = vmul.f32 0.00390625, %v62_v21 }
  0x8f   :  { %v73_v23 = vrot.slane %v72_v20, 2 }
  0x90   :  { %v68_v24 = vmul.f32 %v65_v14, %v64_v22 }
  0x91   :  { %v74_v25 = vadd.f32 %v73_v23, %v72_v20 }
  0x92   :  { %v77_v26 = vsel %vm69_vm1, %v68_v24, 0.0 }
  0x93   :  { %v75_v27 = vrot.slane %v74_v25, 1  ;;  %v78_v28 = vrot.slane %v77_v26, 4 }
  0x95   :  { %v79_v30 = vadd.f32 %v78_v28, %v77_v26  ;;  %v76_v31 = vadd.f32 %v75_v27, %v74_v25 }
  0x97   :  { %v80_v32 = vrot.slane %v79_v30, 2  ;;  %v88_v33 = vadd.f32 %v230_v29, %v76_v31 }
  0x99   :  { %v81_v34 = vadd.f32 %v80_v32, %v79_v30  ;;  %vm90_vm2 = vcmp.ge.f32.partialorder %v88_v33, 0.0  ;;  %v92_v35 = vmul.f32 0.05, %v88_v33  ;;  %v295_v32 = vmov 839922192  }
  0x9b   :  { %v82_v36 = vrot.slane %v81_v34, 1  ;;  %v94_v37 = vsel %vm90_vm2, %v88_v33, %v92_v35  ;;  %v188_v33 = vunpack.c.l.s4 %v295_v32 }
  0x9c   :  { %v96_v38 = vperm.slane %v94_v37, 0 }
  0x9d   :  { %v83_v39 = vadd.f32 %v82_v36, %v81_v34  ;;  %v189_v34 = vunpack.c.0.s8 %v188_v33 }
  0x9e   :  { %101 = vperm.xlu1 %227, %v96_v38  }
  0x9f   :  { %v89_v40 = vadd.f32 %v230_v29, %v83_v39 }
  0xa1   :  { %vm91_vm3 = vcmp.ge.f32.partialorder %v89_v40, 0.0  ;;  %v93_v41 = vmul.f32 0.05, %v89_v40 }
  0xa3   :  { %v95_v42 = vsel %vm91_vm3, %v89_v40, %v93_v41 }
  0xa4   :  { %v103_v43 = vperm.slane %v95_v42, 0 }
  0xa6   :  { %108 = vperm.xlu1 %227, %v103_v43  }
 0x110   :  { %v102_v45 = vpop.permute.xlu1 %101 }
 0x111   :  { %v110_v46 = vmul.f32 %v102_v45, %v66_v44 }
 0x113   :  { %v113_v47 = vsel %vm112_vm4, %v110_v46, 0.0 }
 0x114   :  { %v114_v48 = vrot.slane %v113_v47, 4 }
 0x116   :  { %v115_v49 = vadd.f32 %v114_v48, %v113_v47 }
 0x118   :  { %v116_v50 = vrot.slane %v115_v49, 2  ;;  %v109_v51 = vpop.permute.xlu1 %108 }
 0x119   :  { %v111_v52 = vmul.f32 %v109_v51, %v66_v44 }
 0x11a   :  { %v117_v53 = vadd.f32 %v116_v50, %v115_v49 }
 0x11b   :  { %v120_v54 = vsel %vm112_vm4, %v111_v52, 0.0 }
 0x11c   :  { %v118_v56 = vrot.slane %v117_v53, 1  ;;  %v121_v57 = vrot.slane %v120_v54, 4 }
 0x11e   :  { %v119_v58 = vadd.f32 %v118_v56, %v117_v53  ;;  %v122_v59 = vadd.f32 %v121_v57, %v120_v54 }
 0x120   :  { %v131_v60 = vadd.f32 %v231_v55, %v119_v58  ;;  %v123_v61 = vrot.slane %v122_v59, 2 }
 0x122   :  { %v220_v62 = vmul.f32 -1.442695, %v131_v60  ;;  %v124_v63 = vadd.f32 %v123_v61, %v122_v59 }
 0x124   :  { %232 = vpow2.f32 %v220_v62  ;;  %v125_v2 = vrot.slane %v124_v63, 1 }
 0x126   :  { %v126_v3 = vadd.f32 %v125_v2, %v124_v63 }
 0x128   :  { %v132_v4 = vadd.f32 %v231_v55, %v126_v3 }
 0x12a   :  { %v233_v5 = vpop.eup %232  ;;  %v221_v6 = vmul.f32 -1.442695, %v132_v4 }
 0x12b   :  { %v139_v7 = vadd.f32 1.0, %v233_v5 }
 0x12c   :  { %234 = vpow2.f32 %v221_v6 }
 0x12d   :  { %236 = vrcp.f32 %v139_v7  ;;  %v152_v13 = vand.u32 2147483648, %v139_v7  ;;  %v150_v15 = vand.u32 2147483647, %v139_v7  ;;  %vm146_vm6 = vweird.f32 %v139_v7 }
 0x12f   :  { %v153_v18 = vor.u32 1.1754944e-38, %v152_v13  ;;  %vm151_vm8 = vcmp.eq.f32.partialorder %v150_v15, 8.507059e+37 }
 0x132   :  { %v235_v8 = vpop.eup %234 }
 0x133   :  { %v237_v9 = vpop.eup %236  ;;  %v140_v10 = vadd.f32 1.0, %v235_v8 }
 0x134   :  { %v142_v11 = vmul.f32 %v237_v9, %v139_v7  ;;  %vm147_vm5 = vweird.f32 %v237_v9 }
 0x135   :  { %238 = vrcp.f32 %v140_v10  ;;  %vm148_vm7 = vmor %vm146_vm6, %vm147_vm5  ;;  %v167_v24 = vand.u32 2147483648, %v140_v10  ;;  %v165_v26 = vand.u32 2147483647, %v140_v10  ;;  %vm161_vm10 = vweird.f32 %v140_v10 }
 0x136   :  { %v143_v12 = vsub.f32 1.0, %v142_v11 }
 0x137   :  { %v168_v28 = vor.u32 1.1754944e-38, %v167_v24  ;;  %vm166_vm12 = vcmp.eq.f32.partialorder %v165_v26, 8.507059e+37 }
 0x138   :  { %v144_v14 = vmul.f32 %v237_v9, %v143_v12 }
 0x13a   :  { %v145_v16 = vadd.f32 %v237_v9, %v144_v14 }
 0x13b   :  { %v239_v17 = vpop.eup %238 }
 0x13c   :  { %v149_v19 = vsel %vm148_vm7, %v237_v9, %v145_v16  ;;  %v157_v20 = vmul.f32 %v239_v17, %v140_v10  ;;  %vm162_vm9 = vweird.f32 %v239_v17 }
 0x13d   :  { %v154_v21 = vsel %vm151_vm8, %v153_v18, %v149_v19  ;;  %vm163_vm11 = vmor %vm161_vm10, %vm162_vm9 }
 0x13e   :  { %v171_v22 = vperm.slane %v154_v21, 0  ;;  %v158_v23 = vsub.f32 1.0, %v157_v20 }
 0x140   :  { %176 = vperm.xlu2 %228, %v171_v22   ;;  %v159_v25 = vmul.f32 %v239_v17, %v158_v23 }
 0x142   :  { %v160_v27 = vadd.f32 %v239_v17, %v159_v25 }
 0x144   :  { %v164_v29 = vsel %vm163_vm11, %v239_v17, %v160_v27 }
 0x145   :  { %v169_v30 = vsel %vm166_vm12, %v168_v28, %v164_v29 }
 0x146   :  { %v178_v31 = vperm.slane %v169_v30, 0 }
 0x148   :  { %183 = vperm.xlu2 %228, %v178_v31  }
 0x19a   :  { %v177_v35 = vpop.permute.xlu2 %176 }
 0x19b   :  { %v190_v36 = vperm.slane %v177_v35, %v189_v34 }
 0x19d   :  { %v197_v37 = vmul.f32 %v190_v36, %v333_v0 }
 0x19f   :  { %199 = vst [vmem:[#allocation5] sm:$0xff] %v197_v37 }
 0x1a2   :  { %v184_v38 = vpop.permute.xlu2 %183 }
 0x1a3   :  { %v194_v39 = vperm.slane %v184_v38, %v189_v34 }
 0x1a5   :  { %v198_v40 = vmul.f32 %v194_v39, %v335_v1 }
 0x1a7   :  { %200 = vst [vmem:[#allocation5 + $0x8] sm:$0xff] %v198_v40 }
 0x1a8   :  { %213 = dma.vmem_to_hbm [thread:$0]  %s206_s4, 256, %s208_s7, [#allocation4], %s293_s23, %s293_s23, %s294_s24  }
 0x1a9   :  { %290 = dma.done.wait [#allocation4], 256  }
 0x1aa   :  { %291 = vsyncadd [#allocation4], 4294967040 }
 0x1ab   :  { %218 = vsyncpa [#allocation3], 1 }
 0x1ac   :  { %219 = vsyncpa [#allocation4], 1 }

</bundles_post_ra>
